<compile_context>
chip_gen: v6e
topology: v6e:2x2x1
jax: 0.10.0
libtpu: 0.0.40
codegen_flags: <defaults>
</compile_context>

<pallas_src>
import functools

import jax
import jax.numpy as jnp
import numpy as np
from jax import lax
from jax.experimental import pallas as pl
from jax.experimental.pallas import tpu as pltpu

BN_EPS = 0.001


def _round_up(x, m):
    return (x + m - 1) // m * m


def _pad2(a, shape):
    pads = [(0, t - s) for s, t in zip(a.shape, shape)]
    if all(p == (0, 0) for p in pads):
        return a
    return jnp.pad(a, pads)


def _bn_relu(h, gb):
    """Training-mode BatchNorm1d (batch stats, biased var) folded to one affine, then ReLU."""
    mean = jnp.mean(h, axis=0, keepdims=True)
    cent = h - mean
    var = jnp.mean(cent * cent, axis=0, keepdims=True)
    inv = lax.rsqrt(var + BN_EPS)
    a = inv * gb[0:1, :]            # gamma * inv   (gamma padded with 0 -> padded cols stay 0)
    c = gb[1:2, :] - mean * a       # beta - mean * gamma * inv
    return jnp.maximum(h * a + c, 0.0)


def _fclayers_fused_kernel(ohb_ref, x_ref, w0_ref, wr_ref, catw_ref, gb_ref,
                           o_ref, *, mm_dtype):
    """One grid step == one FCLayers layer; o_ref is the VMEM-resident activation."""
    l = pl.program_id(0)

    # Covariate + Linear-bias contribution for this layer (tiny f32 matmul):
    #   ohb = [one_hot(cats) | 1 | 0...]  (B, cat_pad)
    #   catw[l] = [W_cat ; bias ; 0...]   (cat_pad, dcom_p)
    cov = jnp.dot(ohb_ref[...], catw_ref[...], preferred_element_type=jnp.float32)

    @pl.when(l == 0)
    def _first_layer():
        h = cov + jnp.dot(x_ref[...], w0_ref[...], preferred_element_type=jnp.float32)
        o_ref[...] = _bn_relu(h, gb_ref[...])

    @pl.when(l != 0)
    def _other_layers():
        act = o_ref[...].astype(mm_dtype)        # previous layer output, already in VMEM
        h = cov + jnp.dot(act, wr_ref[...], preferred_element_type=jnp.float32)
        o_ref[...] = _bn_relu(h, gb_ref[...])


def init_fclayers_params(key, n_in, n_out, n_cat_list, n_layers, n_hidden):
    """Deterministic parameter init mirroring nn.Linear / nn.BatchNorm1d defaults."""
    n_cat_list = [c if c > 1 else 0 for c in (n_cat_list or [])]
    cat_dim = sum(n_cat_list)
    layers_dim = [n_in] + (n_layers - 1) * [n_hidden] + [n_out]
    params = []
    for d_in, d_out in zip(layers_dim[:-1], layers_dim[1:]):
        fan_in = d_in + cat_dim           # covariates injected into every layer
        key, kw, kb = jax.random.split(key, 3)
        bound = 1.0 / np.sqrt(fan_in)
        w_t = jax.random.uniform(kw, (fan_in, d_out), jnp.float32, -bound, bound)
        b = jax.random.uniform(kb, (d_out,), jnp.float32, -bound, bound)
        gamma = jnp.ones((d_out,), jnp.float32)
        beta = jnp.zeros((d_out,), jnp.float32)
        params.append((w_t, b, gamma, beta))
    return params, n_cat_list


def pack_fclayers_fused(params, n_cat_list, *, mm_dtype=jnp.bfloat16):
    """Pad / split / stack parameters for the fused kernel."""
    cat_dim = sum(n_cat_list)
    cat_pad = _round_up(cat_dim + 1, 8)            # +1 row carries the Linear bias
    L = len(params)
    d_ins = [p[0].shape[0] - cat_dim for p in params]
    d_outs = [p[0].shape[1] for p in params]
    din_p = _round_up(d_ins[0], 128)                       # first-layer input (can be large)
    dcom_p = _round_up(max(d_outs + d_ins[1:]), 128)       # common width for all other dims

    # First layer main weight kept separate (different, possibly large, input dim).
    w0 = _pad2(params[0][0][: d_ins[0]], (din_p, dcom_p)).astype(mm_dtype)

    # Remaining layers stacked along the layer axis; index 0 is an unused zero block.
    wr = np.zeros((L, dcom_p, dcom_p), np.float32)
    catw = np.zeros((L, cat_pad, dcom_p), np.float32)
    gb = np.zeros((L, 2, dcom_p), np.float32)              # [gamma; beta], zero-padded
    for l, (w_t, b, gamma, beta) in enumerate(params):
        d_in, d_out = d_ins[l], d_outs[l]
        if l > 0:
            wr[l, :d_in, :d_out] = np.asarray(w_t[:d_in])
        catw[l, :cat_dim, :d_out] = np.asarray(w_t[d_in:])
        catw[l, cat_dim, :d_out] = np.asarray(b)
        gb[l, 0, :d_out] = np.asarray(gamma)
        gb[l, 1, :d_out] = np.asarray(beta)

    return dict(
        mm_dtype=mm_dtype, n_cat_list=list(n_cat_list), cat_pad=cat_pad,
        n_layers=L, din_p=din_p, dcom_p=dcom_p, d_out=d_outs[-1],
        w0=w0, wr=jnp.asarray(wr).astype(mm_dtype),
        catw=jnp.asarray(catw), gb=jnp.asarray(gb),
    )


def fclayers_forward(fused, x, *cat_list):
    """Pallas-backed FCLayers.forward (inject_covariates=True), all layers in one call."""
    B = x.shape[0]
    mm_dtype = fused["mm_dtype"]
    cat_pad, din_p, dcom_p, L = fused["cat_pad"], fused["din_p"], fused["dcom_p"], fused["n_layers"]

    # Augmented one-hot block: [one_hot(cat_0) | ... | 1 (bias selector) | 0-pad].
    cols = []
    for n_cat, cat in zip(fused["n_cat_list"], cat_list):
        if n_cat > 1:
            cols.append(jax.nn.one_hot(jnp.asarray(cat).reshape(-1), n_cat, dtype=jnp.float32))
    cols.append(jnp.ones((B, 1), jnp.float32))
    ohb = _pad2(jnp.concatenate(cols, axis=-1), (B, cat_pad))

    x_p = _pad2(x.astype(jnp.float32), (B, din_p)).astype(mm_dtype)

    # Right-size the scoped VMEM limit (conservatively assume double-buffering everywhere;
    # capped at 64 MiB so the same number is valid on v7x as well as v5e/v6e).
    bmm = jnp.dtype(mm_dtype).itemsize
    needed = 2 * (din_p * dcom_p * bmm           # w0 (resident)
                  + dcom_p * dcom_p * bmm        # wr[l] (pipelined)
                  + cat_pad * dcom_p * 4         # catw[l]
                  + 2 * dcom_p * 4               # gamma/beta[l]
                  + B * din_p * bmm              # x (resident)
                  + B * cat_pad * 4              # ohb (resident)
                  + B * dcom_p * 4)              # resident output / activation
    vmem_limit = int(min(max(needed + (4 << 20), 16 << 20), 64 << 20))

    kernel = functools.partial(_fclayers_fused_kernel, mm_dtype=mm_dtype)
    out = pl.pallas_call(
        kernel,
        out_shape=jax.ShapeDtypeStruct((B, dcom_p), jnp.float32),
        grid_spec=pltpu.PrefetchScalarGridSpec(
            num_scalar_prefetch=0,
            grid=(L,),
            in_specs=[
                pl.BlockSpec((B, cat_pad), lambda l: (0, 0)),                # ohb (resident)
                pl.BlockSpec((B, din_p), lambda l: (0, 0)),                  # x   (resident)
                pl.BlockSpec((din_p, dcom_p), lambda l: (0, 0)),             # W0  (resident)
                pl.BlockSpec((None, dcom_p, dcom_p), lambda l: (l, 0, 0)),   # W[l] (pipelined)
                pl.BlockSpec((None, cat_pad, dcom_p), lambda l: (l, 0, 0)),  # [W_cat; bias]
                pl.BlockSpec((None, 2, dcom_p), lambda l: (l, 0, 0)),        # [gamma; beta]
            ],
            out_specs=pl.BlockSpec((B, dcom_p), lambda l: (0, 0)),
        ),
        compiler_params=pltpu.CompilerParams(
            dimension_semantics=("arbitrary",),
            vmem_limit_bytes=vmem_limit,
        ),
    )(ohb, x_p, fused["w0"], fused["wr"], fused["catw"], fused["gb"])
    return out[:, : fused["d_out"]]


def fclayers_forward_ref(params, n_cat_list, x, *cat_list):
    """Pure-JAX f32 reference (mirrors the PyTorch module in training-mode BN, no dropout)."""
    one_hots = []
    for n_cat, cat in zip(n_cat_list, cat_list):
        if n_cat > 1:
            one_hots.append(jax.nn.one_hot(jnp.asarray(cat).reshape(-1), n_cat, dtype=jnp.float32))
    for (w_t, b, gamma, beta) in params:
        if one_hots:
            x = jnp.concatenate([x, *one_hots], axis=-1)
        h = x @ w_t + b[None, :]
        mean = jnp.mean(h, axis=0, keepdims=True)
        var = jnp.mean((h - mean) ** 2, axis=0, keepdims=True)
        y = (h - mean) / jnp.sqrt(var + BN_EPS) * gamma[None, :] + beta[None, :]
        x = jnp.maximum(y, 0.0)
    return x


if __name__ == "__main__":
    # Small, module-consistent shapes.
    B, N_IN, N_HIDDEN, N_OUT, N_LAYERS = 8, 32, 64, 16, 2
    N_CAT_LIST = [3]

    key = jax.random.PRNGKey(0)
    k_params, k_x, k_cat = jax.random.split(key, 3)

    params, n_cat_list = init_fclayers_params(
        k_params, N_IN, N_OUT, N_CAT_LIST, N_LAYERS, N_HIDDEN
    )
    x = jax.random.normal(k_x, (B, N_IN), jnp.float32)
    cat = jax.random.randint(k_cat, (B, 1), 0, N_CAT_LIST[0], jnp.int32)

    ref = jax.block_until_ready(fclayers_forward_ref(params, n_cat_list, x, cat))

    # Strict check: f32 MXU path matches the f32 reference tightly.
    fused_f32 = pack_fclayers_fused(params, n_cat_list, mm_dtype=jnp.float32)
    out_f32 = jax.block_until_ready(fclayers_forward(fused_f32, x, cat))
    np.testing.assert_allclose(np.asarray(out_f32), np.asarray(ref), rtol=1e-5, atol=1e-5)

    # Fast path (all TPU generations): bf16 weight/activation storage, f32 accumulate + BN/ReLU.
    fused_bf16 = pack_fclayers_fused(params, n_cat_list, mm_dtype=jnp.bfloat16)
    out_bf16 = jax.block_until_ready(fclayers_forward(fused_bf16, x, cat))
    np.testing.assert_allclose(np.asarray(out_bf16), np.asarray(ref), rtol=5e-2, atol=5e-2)

    assert out_f32.shape == (B, N_OUT) and out_bf16.shape == (B, N_OUT)
    print("KERNEL_OK")
</pallas_src>

<mosaic_0001>
module attributes {stable_mosaic.version = 11 : i64} {
  func.func @_fclayers_fused_kernel(%arg0: i32, %arg1: memref<8x8xf32, #tpu.memory_space<vmem>>, %arg2: memref<8x128xf32, #tpu.memory_space<vmem>>, %arg3: memref<128x128xf32, #tpu.memory_space<vmem>>, %arg4: memref<1x128x128xf32, #tpu.memory_space<vmem>>, %arg5: memref<1x8x128xf32, #tpu.memory_space<vmem>>, %arg6: memref<1x2x128xf32, #tpu.memory_space<vmem>>, %arg7: memref<8x128xf32, #tpu.memory_space<vmem>>) attributes {dimension_semantics = [#tpu.dimension_semantics<arbitrary>], iteration_bounds = array<i64: 2>, scalar_prefetch = 0 : i64, scratch_operands = 0 : i64, tpu.core_type = #tpu.core_type<tc>, window_params = [{pipeline_mode = #tpu.pipeline_mode<synchronous>, transform_indices = @transform_0, window_bounds = array<i64: 8, 8>}, {pipeline_mode = #tpu.pipeline_mode<synchronous>, transform_indices = @transform_1, window_bounds = array<i64: 8, 128>}, {pipeline_mode = #tpu.pipeline_mode<synchronous>, transform_indices = @transform_2, window_bounds = array<i64: 128, 128>}, {transform_indices = @transform_3, window_bounds = array<i64: 1, 128, 128>}, {transform_indices = @transform_4, window_bounds = array<i64: 1, 8, 128>}, {transform_indices = @transform_5, window_bounds = array<i64: 1, 2, 128>}, {pipeline_mode = #tpu.pipeline_mode<synchronous>, transform_indices = @transform_6, window_bounds = array<i64: 8, 128>}]} {
    %c0 = arith.constant 0 : index
    %c0_0 = arith.constant 0 : index
    %0 = vector.load %arg1[%c0, %c0_0] : memref<8x8xf32, #tpu.memory_space<vmem>>, vector<8x8xf32>
    %c0_1 = arith.constant 0 : index
    %c0_2 = arith.constant 0 : index
    %c0_3 = arith.constant 0 : index
    %1 = vector.load %arg5[%c0_1, %c0_2, %c0_3] : memref<1x8x128xf32, #tpu.memory_space<vmem>>, vector<1x8x128xf32>
    %2 = vector.shape_cast %1 : vector<1x8x128xf32> to vector<8x128xf32>
    %cst = arith.constant dense<0.000000e+00> : vector<8x128xf32>
    %3 = tpu.matmul %0, %2, %cst {dimension_numbers = #tpu.dot_dimension_numbers<[1], [0], [0], [1], [0, 0, 1, 1], [], []>} : vector<8x8xf32>, vector<8x128xf32>, vector<8x128xf32> -> vector<8x128xf32>
    %c0_i32 = arith.constant 0 : i32
    %4 = arith.cmpi eq, %arg0, %c0_i32 : i32
    %5 = arith.extui %4 : i1 to i32
    %c0_i32_4 = arith.constant 0 : i32
    %6 = arith.cmpi ne, %5, %c0_i32_4 : i32
    scf.if %6 {
      %c0_7 = arith.constant 0 : index
      %c0_8 = arith.constant 0 : index
      %10 = vector.load %arg2[%c0_7, %c0_8] : memref<8x128xf32, #tpu.memory_space<vmem>>, vector<8x128xf32>
      %c0_9 = arith.constant 0 : index
      %c0_10 = arith.constant 0 : index
      %11 = vector.load %arg3[%c0_9, %c0_10] : memref<128x128xf32, #tpu.memory_space<vmem>>, vector<128x128xf32>
      %cst_11 = arith.constant dense<0.000000e+00> : vector<8x128xf32>
      %12 = tpu.matmul %10, %11, %cst_11 {dimension_numbers = #tpu.dot_dimension_numbers<[1], [0], [0], [1], [0, 0, 1, 1], [], []>} : vector<8x128xf32>, vector<128x128xf32>, vector<8x128xf32> -> vector<8x128xf32>
      %13 = arith.addf %3, %12 : vector<8x128xf32>
      %c0_12 = arith.constant 0 : index
      %c0_13 = arith.constant 0 : index
      %c0_14 = arith.constant 0 : index
      %14 = vector.load %arg6[%c0_12, %c0_13, %c0_14] : memref<1x2x128xf32, #tpu.memory_space<vmem>>, vector<1x2x128xf32>
      %15 = vector.shape_cast %14 : vector<1x2x128xf32> to vector<2x128xf32>
      %cst_15 = arith.constant dense<0.000000e+00> : vector<128xf32>
      %16 = vector.multi_reduction <add>, %13, %cst_15 [0] : vector<8x128xf32> to vector<128xf32>
      %17 = vector.shape_cast %16 : vector<128xf32> to vector<1x128xf32>
      %cst_16 = arith.constant 8.000000e+00 : f32
      %18 = vector.broadcast %cst_16 : f32 to vector<1x128xf32>
      %19 = arith.divf %17, %18 : vector<1x128xf32>
      %20 = vector.broadcast %19 : vector<1x128xf32> to vector<8x128xf32>
      %21 = arith.subf %13, %20 : vector<8x128xf32>
      %22 = arith.mulf %21, %21 : vector<8x128xf32>
      %cst_17 = arith.constant dense<0.000000e+00> : vector<128xf32>
      %23 = vector.multi_reduction <add>, %22, %cst_17 [0] : vector<8x128xf32> to vector<128xf32>
      %24 = vector.shape_cast %23 : vector<128xf32> to vector<1x128xf32>
      %cst_18 = arith.constant 8.000000e+00 : f32
      %25 = vector.broadcast %cst_18 : f32 to vector<1x128xf32>
      %26 = arith.divf %24, %25 : vector<1x128xf32>
      %cst_19 = arith.constant 1.000000e-03 : f32
      %27 = vector.broadcast %cst_19 : f32 to vector<1x128xf32>
      %28 = arith.addf %26, %27 : vector<1x128xf32>
      %29 = math.rsqrt %28 : vector<1x128xf32>
      %30 = vector.extract_strided_slice %15 {offsets = [0, 0], sizes = [1, 128], strides = [1, 1]} : vector<2x128xf32> to vector<1x128xf32>
      %31 = arith.mulf %29, %30 : vector<1x128xf32>
      %32 = vector.extract_strided_slice %15 {offsets = [1, 0], sizes = [1, 128], strides = [1, 1]} : vector<2x128xf32> to vector<1x128xf32>
      %33 = arith.mulf %19, %31 : vector<1x128xf32>
      %34 = arith.subf %32, %33 : vector<1x128xf32>
      %35 = vector.broadcast %31 : vector<1x128xf32> to vector<8x128xf32>
      %36 = arith.mulf %13, %35 : vector<8x128xf32>
      %37 = vector.broadcast %34 : vector<1x128xf32> to vector<8x128xf32>
      %38 = arith.addf %36, %37 : vector<8x128xf32>
      %cst_20 = arith.constant 0.000000e+00 : f32
      %39 = vector.broadcast %cst_20 : f32 to vector<8x128xf32>
      %40 = arith.maximumf %38, %39 : vector<8x128xf32>
      %c0_21 = arith.constant 0 : index
      %c0_22 = arith.constant 0 : index
      %41 = vector.load %arg7[%c0_21, %c0_22] : memref<8x128xf32, #tpu.memory_space<vmem>>, vector<8x128xf32>
      tpu.vector_store %arg7[%c0_21, %c0_22], %40 {strides = array<i32>} : memref<8x128xf32, #tpu.memory_space<vmem>>, vector<8x128xf32>,
    } else {
    }
    %c0_i32_5 = arith.constant 0 : i32
    %7 = arith.cmpi ne, %arg0, %c0_i32_5 : i32
    %8 = arith.extui %7 : i1 to i32
    %c0_i32_6 = arith.constant 0 : i32
    %9 = arith.cmpi ne, %8, %c0_i32_6 : i32
    scf.if %9 {
      %c0_7 = arith.constant 0 : index
      %c0_8 = arith.constant 0 : index
      %10 = vector.load %arg7[%c0_7, %c0_8] : memref<8x128xf32, #tpu.memory_space<vmem>>, vector<8x128xf32>
      %c0_9 = arith.constant 0 : index
      %c0_10 = arith.constant 0 : index
      %c0_11 = arith.constant 0 : index
      %11 = vector.load %arg4[%c0_9, %c0_10, %c0_11] : memref<1x128x128xf32, #tpu.memory_space<vmem>>, vector<1x128x128xf32>
      %12 = vector.shape_cast %11 : vector<1x128x128xf32> to vector<128x128xf32>
      %cst_12 = arith.constant dense<0.000000e+00> : vector<8x128xf32>
      %13 = tpu.matmul %10, %12, %cst_12 {dimension_numbers = #tpu.dot_dimension_numbers<[1], [0], [0], [1], [0, 0, 1, 1], [], []>} : vector<8x128xf32>, vector<128x128xf32>, vector<8x128xf32> -> vector<8x128xf32>
      %14 = arith.addf %3, %13 : vector<8x128xf32>
      %c0_13 = arith.constant 0 : index
      %c0_14 = arith.constant 0 : index
      %c0_15 = arith.constant 0 : index
      %15 = vector.load %arg6[%c0_13, %c0_14, %c0_15] : memref<1x2x128xf32, #tpu.memory_space<vmem>>, vector<1x2x128xf32>
      %16 = vector.shape_cast %15 : vector<1x2x128xf32> to vector<2x128xf32>
      %cst_16 = arith.constant dense<0.000000e+00> : vector<128xf32>
      %17 = vector.multi_reduction <add>, %14, %cst_16 [0] : vector<8x128xf32> to vector<128xf32>
      %18 = vector.shape_cast %17 : vector<128xf32> to vector<1x128xf32>
      %cst_17 = arith.constant 8.000000e+00 : f32
      %19 = vector.broadcast %cst_17 : f32 to vector<1x128xf32>
      %20 = arith.divf %18, %19 : vector<1x128xf32>
      %21 = vector.broadcast %20 : vector<1x128xf32> to vector<8x128xf32>
      %22 = arith.subf %14, %21 : vector<8x128xf32>
      %23 = arith.mulf %22, %22 : vector<8x128xf32>
      %cst_18 = arith.constant dense<0.000000e+00> : vector<128xf32>
      %24 = vector.multi_reduction <add>, %23, %cst_18 [0] : vector<8x128xf32> to vector<128xf32>
      %25 = vector.shape_cast %24 : vector<128xf32> to vector<1x128xf32>
      %cst_19 = arith.constant 8.000000e+00 : f32
      %26 = vector.broadcast %cst_19 : f32 to vector<1x128xf32>
      %27 = arith.divf %25, %26 : vector<1x128xf32>
      %cst_20 = arith.constant 1.000000e-03 : f32
      %28 = vector.broadcast %cst_20 : f32 to vector<1x128xf32>
      %29 = arith.addf %27, %28 : vector<1x128xf32>
      %30 = math.rsqrt %29 : vector<1x128xf32>
      %31 = vector.extract_strided_slice %16 {offsets = [0, 0], sizes = [1, 128], strides = [1, 1]} : vector<2x128xf32> to vector<1x128xf32>
      %32 = arith.mulf %30, %31 : vector<1x128xf32>
      %33 = vector.extract_strided_slice %16 {offsets = [1, 0], sizes = [1, 128], strides = [1, 1]} : vector<2x128xf32> to vector<1x128xf32>
      %34 = arith.mulf %20, %32 : vector<1x128xf32>
      %35 = arith.subf %33, %34 : vector<1x128xf32>
      %36 = vector.broadcast %32 : vector<1x128xf32> to vector<8x128xf32>
      %37 = arith.mulf %14, %36 : vector<8x128xf32>
      %38 = vector.broadcast %35 : vector<1x128xf32> to vector<8x128xf32>
      %39 = arith.addf %37, %38 : vector<8x128xf32>
      %cst_21 = arith.constant 0.000000e+00 : f32
      %40 = vector.broadcast %cst_21 : f32 to vector<8x128xf32>
      %41 = arith.maximumf %39, %40 : vector<8x128xf32>
      %c0_22 = arith.constant 0 : index
      %c0_23 = arith.constant 0 : index
      %42 = vector.load %arg7[%c0_22, %c0_23] : memref<8x128xf32, #tpu.memory_space<vmem>>, vector<8x128xf32>
      tpu.vector_store %arg7[%c0_22, %c0_23], %41 {strides = array<i32>} : memref<8x128xf32, #tpu.memory_space<vmem>>, vector<8x128xf32>,
    } else {
    }
    return
  }
  func.func @transform_0(%arg0: i32) -> (i32, i32) {
    %c0_i32 = arith.constant 0 : i32
    %c0_i32_0 = arith.constant 0 : i32
    %c0_i32_1 = arith.constant 0 : i32
    return %c0_i32, %c0_i32_0 : i32, i32
  }
  func.func @transform_1(%arg0: i32) -> (i32, i32) {
    %c0_i32 = arith.constant 0 : i32
    %c0_i32_0 = arith.constant 0 : i32
    %c0_i32_1 = arith.constant 0 : i32
    return %c0_i32, %c0_i32_0 : i32, i32
  }
  func.func @transform_2(%arg0: i32) -> (i32, i32) {
    %c0_i32 = arith.constant 0 : i32
    %c0_i32_0 = arith.constant 0 : i32
    %c0_i32_1 = arith.constant 0 : i32
    return %c0_i32, %c0_i32_0 : i32, i32
  }
  func.func @transform_3(%arg0: i32) -> (i32, i32, i32) {
    %c0_i32 = arith.constant 0 : i32
    %c0_i32_0 = arith.constant 0 : i32
    %c0_i32_1 = arith.constant 0 : i32
    return %arg0, %c0_i32, %c0_i32_0 : i32, i32, i32
  }
  func.func @transform_4(%arg0: i32) -> (i32, i32, i32) {
    %c0_i32 = arith.constant 0 : i32
    %c0_i32_0 = arith.constant 0 : i32
    %c0_i32_1 = arith.constant 0 : i32
    return %arg0, %c0_i32, %c0_i32_0 : i32, i32, i32
  }
  func.func @transform_5(%arg0: i32) -> (i32, i32, i32) {
    %c0_i32 = arith.constant 0 : i32
    %c0_i32_0 = arith.constant 0 : i32
    %c0_i32_1 = arith.constant 0 : i32
    return %arg0, %c0_i32, %c0_i32_0 : i32, i32, i32
  }
  func.func @transform_6(%arg0: i32) -> (i32, i32) {
    %c0_i32 = arith.constant 0 : i32
    %c0_i32_0 = arith.constant 0 : i32
    %c0_i32_1 = arith.constant 0 : i32
    return %c0_i32, %c0_i32_0 : i32, i32
  }
}

</mosaic_0001>

<bundles_post_ra>
// kernel: tpu_custom_call.1
= control target key start
LH: loop header
LB: loop body
LE: loop exit
PB: predicated region body
PF: predicated region fallthrough
CT: control target
= control target key end

     0   :  { %s1532_s0 = inlined_call_operand.hbm [shape: f32[8,8], index: 0, kind: input, shape index: {}]   ;;  %s1533_s1 = inlined_call_operand.hbm [shape: f32[8,128], index: 1, kind: input, shape index: {}]   ;;  %s1534_s2 = inlined_call_operand.hbm [shape: f32[128,128], index: 2, kind: input, shape index: {}]   ;;  %s1535_s3 = inlined_call_operand.hbm [shape: f32[2,128,128], index: 3, kind: input, shape index: {}]   ;;  %s1536_s4 = inlined_call_operand.hbm [shape: f32[2,8,128], index: 4, kind: input, shape index: {}]   ;;  %s1537_s5 = inlined_call_operand.vmem [shape: f32[2,2,128], index: 5, kind: input, shape index: {}]   ;;  %s1538_s6 = inlined_call_operand.hbm [shape: f32[8,128], index: 6, kind: output, shape index: {}]  }
   0x1   :  { %1543 = sst [smem:[#allocation16_spill]] %s1532_s0 }
   0x2   :  { %11 = vsyncpa [#allocation3], 0 }
   0x3   :  { %12 = vsyncpa [#allocation6], 0 }
   0x4   :  { %13 = vsyncpa [#allocation9], 0 }
   0x5   :  { %15 = vsyncpa [#allocation9 + $0x1], 0 }
   0x6   :  { %16 = vsyncpa [#allocation4], 0  ;;  %s1291_s21 = smov 0   ;;  %s1293_s22 = smov 0  }
   0x7   :  { %s1295_s23 = smov 0   ;;  %s1297_s24 = smov 0  }
   0x8 LB: > { %s1310_s25 = sadd.s32 4294967295, %s1240_s24   ;;  %p105_p0 = scmp.ne.s32.totalorder %s1232_s22, %s1228_s21  ;;  %s1240_s24 = sphi %s1297_s24, %s1563_s24   ;;  %s1236_s23 = sphi %s1295_s23, %s1562_s23   ;;  %s1232_s22 = sphi %s1293_s22, %s1561_s22   ;;  %s1228_s21 = sphi %s1291_s21, %s1560_s21  }
   0x9   : > { %p1539_p1 = scmp.eq.s32.totalorder %s1310_s25, 0  ;;  %p806_p2 = scmp.ge.s32.totalorder %s1240_s24, 1 }
   0xa   : > { %p189_p3 = scmp.lt.s32.totalorder %s1240_s24, 3  ;;  %s1242_s28 = smov [#allocation5]  }
   0xb   : > { %p1319_p5 = por %p1539_p1, %p105_p0  ;;  %s213_s29 = sshll.u32 %s1242_s28, 4  ;;  %s214_s29 = int_to_ptr.vmem [resolvable:$true] %s213_s29 }
   0xc   : > { %p1323_p6 = pnand %p806_p2, %p189_p3  ;;  %s1330_s30 = sadd.s32 1, %s1240_s24  }
   0xd   : > { %s1544_s26 = scalar_select %p1319_p5, 1, 0 }
   0xe   : > { %s1545_s27 = scalar_select %p1323_p6, 1, 0 }
   0xf   : > { %p962_p7 = pneg %p1323_p6  ;;  %s89_s8 = ssub.s32 %s1240_s24, %s1330_s30 }
  0x10   : > { %p1340_p9 = scmp.eq.s32.totalorder %s89_s8, 0  ;;  %s92_s10 = sadd.s32 1, %s1236_s23 }
  0x11   : > { %p1334_p8 = pnand %p962_p7, %p1539_p1  ;;  %p99_p10 = scmp.ne.s32.totalorder %s1236_s23, %s1232_s22 }
  0x12   : > { %s1047_s11 = scalar_lea.vmem %s214_s29, 128  ;;  %p1055_p2 = scmp.lt.s32.totalorder %s214_s29, %s214_s29 }
  0x13   : > { %p1540_p11 = pneg %p1334_p8  ;;  %p1048_p12 = scmp.ne.s32.totalorder %s214_s29, %s1047_s11 }
  0x14   : > { %p1056_p3 = scmp.lt.s32.totalorder %s1047_s11, %s1047_s11 }
  0x15   : > { %p1050_p13 = pnand %p1048_p12, %p1540_p11 }
  0x16   : > { %p1057_p7 = por %p1056_p3, %p1055_p2 }
  0x17   : > { %p1051_p0 = pneg %p1050_p13 }
  0x19   : > { %p1058_p4 = pnand %p1057_p7, %p1051_p0 }
  0x1b   : > { %1061 = shalt.err (!%p1058_p4)
}
  0x1c   : > { %968 = dma.hbm_to_vmem [thread:$0]  (!%p1334_p8), %s1533_s1, 128, %s214_s29, [#allocation6]  }
  0x1d   : > { %s1360_s14 = scalar_select %p1340_p9, %s1236_s23, %s92_s10  }
  0x1e   : > { %p100_p4 = scmp.eq.s32.totalorder %s1240_s24, 0  ;;  %p982_p12 = scmp.lt.s32.totalorder %s1240_s24, 2 }
  0x1f   : > { %s237_s15 = sand.u32 1, %s1240_s24   ;;  %s239_s16 = sand.u32 1, %s1236_s23  }
  0x20   : > { %p101_p13 = por %p100_p4, %p99_p10  ;;  %s811_s17 = sshll.u32 %s239_s16, 7 }
  0x21   : > { %s830_s18 = sshll.u32 %s1240_s24, 11  ;;  %s241_s28 = scalar_lea.vmem [#allocation8], %s811_s17 }
  0x22   : > { %s1375_s21 = scalar_lea.hbm %s1535_s3, %s830_s18  ;;  %s248_s29 = sshll.u32 %s241_s28, 4  ;;  %s1381_s29 = int_to_ptr.vmem [resolvable:$true] %s248_s29 }
  0x23   : > { %p1377_p9 = pnand %p982_p12, %p101_p13  ;;  %s1243_s9 = smov [#allocation2]  }
  0x24   : > { %s1383_s10 = sshll.u32 %s1243_s9, 4  ;;  %s1385_s11 = scalar_lea.sflag [#allocation9], %s237_s15  ;;  %s203_s10 = int_to_ptr.vmem [resolvable:$true] %s1383_s10 }
  0x25   : > { %s1062_s12 = scalar_lea.hbm %s1375_s21, 2048  ;;  %p1064_p0 = pneg %p1377_p9 }
  0x26   : > { %p1063_p10 = scmp.ne.s32.totalorder %s1375_s21, %s1062_s12  ;;  %s1067_s18 = scalar_lea.hbm %s1535_s3, 4096 }
  0x27   : > { %p1068_p7 = scmp.lt.s32.totalorder %s1375_s21, %s1535_s3  ;;  %p1069_p4 = scmp.lt.s32.totalorder %s1067_s18, %s1062_s12 }
  0x28   : > { %p1065_p2 = pnand %p1064_p0, %p1063_p10 }
  0x29   : > { %p1070_p12 = por %p1069_p4, %p1068_p7 }
  0x2a   : > { %p1066_p3 = pneg %p1065_p2 }
  0x2c   : > { %p1071_p13 = pnand %p1070_p12, %p1066_p3 }
  0x2e   : > { %1074 = shalt.err (!%p1071_p13)
}
  0x2f   : > { %s1075_s15 = scalar_lea.vmem %s1381_s29, 2048  ;;  %s1244_s28 = smov [#allocation8]  }
  0x30   : > { %p1076_p1 = scmp.ne.s32.totalorder %s1381_s29, %s1075_s15  ;;  %s1080_s9 = sshll.u32 %s1244_s28, 4  ;;  %s1081_s9 = int_to_ptr.vmem [resolvable:$false] %s1080_s9 }
  0x31   : > { %s1082_s13 = scalar_lea.vmem %s1081_s9, 4096  ;;  %p1083_p11 = scmp.lt.s32.totalorder %s1381_s29, %s1081_s9 }
  0x32   : > { %p1078_p10 = pnand %p1076_p1, %p1064_p0  ;;  %p1084_p5 = scmp.lt.s32.totalorder %s1082_s13, %s1075_s15 }
  0x34   : > { %p1079_p2 = pneg %p1078_p10  ;;  %p1085_p6 = por %p1084_p5, %p1083_p11 }
  0x36   : > { %p1086_p7 = pnand %p1085_p6, %p1079_p2 }
  0x38   : > { %1089 = shalt.err (!%p1086_p7)
}
  0x39   : > { %s1245_s12 = smov 128   ;;  %s1246_s17 = smov 8  }
  0x3a   : > { %975 = dma.hbm_to_vmem [thread:$0]  (!%p1377_p9), %s1375_s21, 2048, %s1381_s29, %s1385_s11, %s1245_s12, %s1245_s12, %s1246_s17  }
  0x3b   : > { %s1101_s18 = scalar_lea.vmem %s203_s10, 128  ;;  %p1549_p5 = pneg %p1334_p8 }
  0x3c   : > { %p1102_p1 = scmp.ne.s32.totalorder %s203_s10, %s1101_s18  ;;  %p1109_p3 = scmp.lt.s32.totalorder %s203_s10, %s203_s10 }
  0x3d   : > { %p1110_p4 = scmp.lt.s32.totalorder %s1101_s18, %s1101_s18 }
  0x3e   : > { %p1104_p6 = pnand %p1102_p1, %p1549_p5 }
  0x3f   : > { %p1111_p12 = por %p1110_p4, %p1109_p3 }
  0x40   : > { %p1105_p11 = pneg %p1104_p6 }
  0x42   : > { %p1112_p13 = pnand %p1111_p12, %p1105_p11 }
  0x44   : > { %1115 = shalt.err (!%p1112_p13)
}
  0x45   : > { %s1550_s0 = sld [smem:[#allocation16_spill]]  ;;  %s1247_s21 = smov [#allocation7]  }
  0x46   : > { %s223_s29 = sshll.u32 %s1247_s21, 4  ;;  %s814_s15 = sshll.u32 %s239_s16, 3  ;;  %s224_s29 = int_to_ptr.vmem [resolvable:$true] %s223_s29 }
  0x47   : > { %s1127_s28 = scalar_lea.vmem %s224_s29, 2048  ;;  %p1551_p2 = pmov %p1549_p5 }
  0x48   : > { %p1128_p10 = scmp.ne.s32.totalorder %s224_s29, %s1127_s28  ;;  %p1135_p5 = scmp.lt.s32.totalorder %s224_s29, %s224_s29 }
  0x49   : > { %p1136_p6 = scmp.lt.s32.totalorder %s1127_s28, %s1127_s28 }
  0x4a   : > { %p1130_p7 = pnand %p1128_p10, %p1551_p2 }
  0x4b   : > { %965 = dma.hbm_to_vmem [thread:$0]  (!%p1334_p8), %s1550_s0, 128, %s203_s10, [#allocation3]  }
  0x4c   : > { %p1131_p1 = pneg %p1130_p7  ;;  %p1137_p11 = por %p1136_p6, %p1135_p5 }
  0x4e   : > { %p1138_p3 = pnand %p1137_p11, %p1131_p1 }
  0x50   : > { %1141 = shalt.err (!%p1138_p3)
}
  0x51   : > { %971 = dma.hbm_to_vmem [thread:$0]  (!%p1334_p8), %s1534_s2, 2048, %s224_s29, [#allocation6], %s1245_s12, %s1245_s12, %s1246_s17  }
  0x52   : > { %s815_s16 = sshll.u32 %s1240_s24, 7  ;;  %s262_s13 = scalar_lea.vmem [#allocation10], %s814_s15 }
  0x53   : > { %s269_s18 = sshll.u32 %s262_s13, 4  ;;  %s267_s21 = scalar_lea.hbm %s1536_s4, %s815_s16  ;;  %s270_s18 = int_to_ptr.vmem [resolvable:$true] %s269_s18 }
  0x54   : > { %s1142_s28 = scalar_lea.hbm %s267_s21, 128  ;;  %s1147_s10 = scalar_lea.hbm %s1536_s4, 256 }
  0x55   : > { %p1143_p4 = scmp.ne.s32.totalorder %s267_s21, %s1142_s28  ;;  %p1148_p8 = scmp.lt.s32.totalorder %s267_s21, %s1536_s4 }
  0x56   : > { %p1149_p10 = scmp.lt.s32.totalorder %s1147_s10, %s1142_s28 }
  0x57   : > { %p1145_p12 = pnand %p1143_p4, %p1064_p0 }
  0x58   : > { %p1150_p2 = por %p1149_p10, %p1148_p8 }
  0x59   : > { %p1146_p13 = pneg %p1145_p12 }
  0x5b   : > { %p1151_p7 = pnand %p1150_p2, %p1146_p13 }
  0x5d   : > { %1154 = shalt.err (!%p1151_p7)
}
  0x5e   : > { %s1155_s24 = scalar_lea.vmem %s270_s18, 128  ;;  %s1248_s17 = smov [#allocation10]  }
  0x5f   : > { %p1156_p1 = scmp.ne.s32.totalorder %s270_s18, %s1155_s24  ;;  %s1160_s29 = sshll.u32 %s1248_s17, 4  ;;  %s1161_s29 = int_to_ptr.vmem [resolvable:$false] %s1160_s29 }
  0x60   : > { %s1162_s0 = scalar_lea.vmem %s1161_s29, 256  ;;  %p1163_p11 = scmp.lt.s32.totalorder %s270_s18, %s1161_s29 }
  0x61   : > { %p1158_p5 = pnand %p1156_p1, %p1064_p0  ;;  %p1164_p3 = scmp.lt.s32.totalorder %s1162_s0, %s1155_s24 }
  0x63   : > { %p1159_p6 = pneg %p1158_p5  ;;  %p1165_p4 = por %p1164_p3, %p1163_p11 }
  0x65   : > { %p1166_p12 = pnand %p1165_p4, %p1159_p6 }
  0x67   : > { %1169 = shalt.err (!%p1166_p12)
}
  0x68   : > { %978 = dma.hbm_to_vmem [thread:$0]  (!%p1377_p9), %s267_s21, 128, %s270_s18, %s1385_s11  }
  0x69   : > { %p1552_p13 = scmp.ne.s32.totalorder %s1545_s27, 0 }
  0x6a   : > { %p1553_p8 = scmp.eq.s32.totalorder (!%p1552_p13), %s1310_s25, 0 }
  0x6b   : > { %285 = sbr.rel (%p1552_p13) target bundleno = 925 (0x39d), region = 44 }
  0x70   : > { %1211 = dma.done.wait (%p1553_p8), [#allocation3], 128   ;;  %p1554_p0 = pmov %p1553_p8 }
  0x72   : > { %1213 = vsyncadd (%p1554_p0), [#allocation3], 4294967168  ;;  %p1555_p10 = pmov %p1554_p0 }
  0x73   : > { %p1556_p2 = pmov %p1554_p0 }
  0x74   : > { %1215 = dma.done.wait (%p1555_p10), [#allocation6], 2176  }
  0x75   : > { %1217 = vsyncadd (%p1556_p2), [#allocation6], 4294965120  ;;  %s299_s8 = sand.u32 1, %s1310_s25   ;;  %s301_s11 = sand.u32 1, %s1232_s22  }
  0x76   : > { %s820_s15 = sshll.u32 %s301_s11, 7  ;;  %s300_s27 = scalar_lea.sflag [#allocation9], %s299_s8 }
  0x77   : > { %s1468_s16 = scalar_lea.vmem [#allocation8], %s820_s15  ;;  %p1557_p9 = scmp.ne.s32.totalorder %s1544_s26, 0 }
  0x79   : > { %1219 = dma.done.wait (%p1557_p9), %s300_s27, 2176  }
  0x7a   : > { %1221 = vsyncadd (%p1557_p9), %s300_s27, 4294965120  ;;  %p345_p7 = scmp.lt.s32.totalorder %s1310_s25, 1  ;;  %v1249_v0 = vmov 0.0   ;;  %s821_s13 = sshll.u32 %s301_s11, 3  ;;  %vm1250_vm0 = vmmov 0   ;;  %vm351_vm1 = vcmask 64512  }
  0x7b   : > { %867 = vmatprep.subr.mxu0 %v1249_v0  ;;  %869 = vmatprep.mubr.msk.f32.mxu0 %vm1250_vm0, %v1249_v0  ;;  %s312_s7 = scalar_lea.vmem [#allocation10], %s821_s13  ;;  %v349_v2 = vld [vmem:[#allocation2] sm:$0xff]  ;;  %p1558_p1 = scmp.ne.s32.totalorder %s1310_s25, 0 }
  0x7c   : > { %s346_s18 = scalar_select %p345_p7, %s1310_s25, 1  ;;  %v350_v1 = vld [vmem:[%s312_s7] sm:$0xff] }
  0x7d   : > { %868 = vmatpush3.msra.mxu0 %v350_v1 }
  0x7e   : > { %s822_s19 = sshll.u32 %s346_s18, 1  ;;  %870 = vmatmul.mubr.msk.f32.vlgmr.msra.gmra.mxu0 %vm351_vm1, %v349_v2 }
  0x7f   : > { %s1479_s28 = scalar_lea.vmem %s1537_s5, %s822_s19 }
 0x13c   : > { %428 = sbr.rel (%p1558_p1) target bundleno = 612 (0x264), region = 68 }
 0x13e   : > { %v1481_v3 = vpop.f32.mrf.mxu0 }
 0x140   : > { %v871_v4 = vpop.f32.mrf.mxu0 }
 0x141   : > { %v445_v5 = vld [vmem:[#allocation7 + $0x78] sm:$0xff]  ;;  %v1251_v6 = vmov 0.0   ;;  %v444_v7 = vld [vmem:[#allocation7 + $0x70] sm:$0xff]  ;;  %vm1252_vm2 = vmmov 0   ;;  %v443_v8 = vld [vmem:[#allocation7 + $0x68] sm:$0xff]  ;;  %v543_v43 = vlaneseq }
 0x142   : > { %872 = vmatprep.subr.mxu0 %v1251_v6  ;;  %904 = vmatprep.mubr.msk.f32.mxu0 %vm1252_vm2, %v1251_v6  ;;  %v442_v9 = vld [vmem:[#allocation7 + $0x60] sm:$0xff]  ;;  %v441_v10 = vld [vmem:[#allocation7 + $0x58] sm:$0xff]  ;;  %v440_v11 = vld [vmem:[#allocation7 + $0x50] sm:$0xff] }
 0x143   : > { %873 = vmatpush3.msra.mxu0 %v445_v5  ;;  %v439_v12 = vld [vmem:[#allocation7 + $0x48] sm:$0xff]  ;;  %v438_v13 = vld [vmem:[#allocation7 + $0x40] sm:$0xff]  ;;  %v437_v14 = vld [vmem:[#allocation7 + $0x38] sm:$0xff]  ;;  %v544_v44 = vshrl.u32 %v543_v43, 7 }
 0x144   : > { %874 = vmatprep.subr.mxu0 %v1251_v6  ;;  %v436_v15 = vld [vmem:[#allocation7 + $0x30] sm:$0xff]  ;;  %v435_v16 = vld [vmem:[#allocation7 + $0x28] sm:$0xff]  ;;  %v434_v17 = vld [vmem:[#allocation7 + $0x20] sm:$0xff] }
 0x145   : > { %875 = vmatpush3.msra.mxu0 %v444_v7  ;;  %v433_v18 = vld [vmem:[#allocation7 + $0x18] sm:$0xff]  ;;  %v432_v19 = vld [vmem:[#allocation7 + $0x10] sm:$0xff]  ;;  %v431_v20 = vld [vmem:[#allocation7 + $0x8] sm:$0xff]  ;;  %v545_v48 = vsub.s32 0, %v544_v44  ;;  %v550_v52 = vsub.s32 1, %v544_v44 }
 0x146   : > { %876 = vmatprep.subr.mxu0 %v1251_v6  ;;  %v430_v21 = vld [vmem:[#allocation7] sm:$0xff]  ;;  %v429_v22 = vld [vmem:[#allocation5] sm:$0xff]  ;;  %v517_v45 = vld [vmem:[%s1479_s28] sm:$0x3] }
 0x147   : > { %877 = vmatpush3.msra.mxu0 %v443_v8 }
 0x148   : > { %878 = vmatprep.subr.mxu0 %v1251_v6 }
 0x149   : > { %879 = vmatpush3.msra.mxu0 %v442_v9 }
 0x14a   : > { %880 = vmatprep.subr.mxu0 %v1251_v6 }
 0x14b   : > { %881 = vmatpush3.msra.mxu0 %v441_v10 }
 0x14c   : > { %882 = vmatprep.subr.mxu0 %v1251_v6 }
 0x14d   : > { %883 = vmatpush3.msra.mxu0 %v440_v11 }
 0x14e   : > { %884 = vmatprep.subr.mxu0 %v1251_v6 }
 0x14f   : > { %885 = vmatpush3.msra.mxu0 %v439_v12 }
 0x150   : > { %886 = vmatprep.subr.mxu0 %v1251_v6 }
 0x151   : > { %887 = vmatpush3.msra.mxu0 %v438_v13 }
 0x152   : > { %888 = vmatprep.subr.mxu0 %v1251_v6 }
 0x153   : > { %889 = vmatpush3.msra.mxu0 %v437_v14 }
 0x154   : > { %890 = vmatprep.subr.mxu0 %v1251_v6 }
 0x155   : > { %891 = vmatpush3.msra.mxu0 %v436_v15 }
 0x156   : > { %892 = vmatprep.subr.mxu0 %v1251_v6 }
 0x157   : > { %893 = vmatpush3.msra.mxu0 %v435_v16 }
 0x158   : > { %894 = vmatprep.subr.mxu0 %v1251_v6 }
 0x159   : > { %895 = vmatpush3.msra.mxu0 %v434_v17 }
 0x15a   : > { %896 = vmatprep.subr.mxu0 %v1251_v6 }
 0x15b   : > { %897 = vmatpush3.msra.mxu0 %v433_v18 }
 0x15c   : > { %898 = vmatprep.subr.mxu0 %v1251_v6 }
 0x15d   : > { %899 = vmatpush3.msra.mxu0 %v432_v19 }
 0x15e   : > { %900 = vmatprep.subr.mxu0 %v1251_v6 }
 0x15f   : > { %901 = vmatpush3.msra.mxu0 %v431_v20 }
 0x160   : > { %902 = vmatprep.subr.mxu0 %v1251_v6 }
 0x161   : > { %903 = vmatpush3.msra.mxu0 %v430_v21 }
 0x162   : > { %905 = vmatmul.mubr.f32.vlgmr.msra.gmra.mxu0 %v429_v22 }
 0x222   : > { %v512_v23 = vpop.f32.mrf.mxu0 }
 0x223   : > { %v516_v24 = vadd.f32 %v512_v23, %v1481_v3 }
 0x224   : > { %v906_v25 = vpop.f32.mrf.mxu0 }
 0x225   : > { %v518_v26 = vrot.slane %v516_v24, 4 }
 0x227   : > { %v519_v27 = vadd.f32 %v518_v26, %v516_v24 }
 0x229   : > { %v520_v28 = vrot.slane %v519_v27, 2 }
 0x22b   : > { %v521_v29 = vadd.f32 %v520_v28, %v519_v27 }
 0x22d   : > { %v522_v30 = vrot.slane %v521_v29, 1 }
 0x22f   : > { %v523_v31 = vadd.f32 %v522_v30, %v521_v29 }
 0x231   : > { %v525_v32 = vmul.f32 0.125, %v523_v31 }
 0x233   : > { %v526_v33 = vsub.f32 %v516_v24, %v525_v32 }
 0x235   : > { %v527_v34 = vmul.f32 %v526_v33, %v526_v33 }
 0x237   : > { %v528_v35 = vrot.slane %v527_v34, 4 }
 0x239   : > { %v529_v36 = vadd.f32 %v528_v35, %v527_v34 }
 0x23b   : > { %v530_v37 = vrot.slane %v529_v36, 2 }
 0x23d   : > { %v531_v38 = vadd.f32 %v530_v37, %v529_v36 }
 0x23f   : > { %v532_v39 = vrot.slane %v531_v38, 1 }
 0x241   : > { %v533_v40 = vadd.f32 %v532_v39, %v531_v38 }
 0x243   : > { %v534_v41 = vmul.f32 0.125, %v533_v40 }
 0x245   : > { %v535_v42 = vadd.f32 0.001, %v534_v41 }
 0x247   : > { %1032 = vrsqrt.f32 %v535_v42 }
 0x254   : > { %v1033_v46 = vpop.eup %1032 }
 0x255   : > { %v537_v47 = vmul.f32 %v1033_v46, %v517_v45 }
 0x257   : > { %v538_v49 = vmul.f32 %v537_v47, %v525_v32  ;;  %v546_v51 = vrot.slane %v537_v47, %v545_v48 }
 0x259   : > { %v540_v50 = vrot.slane %v538_v49, 7  ;;  %v547_v54 = vmul.f32 %v546_v51, %v516_v24 }
 0x25b   : > { %v542_v53 = vsub.f32 %v517_v45, %v540_v50 }
 0x25d   : > { %v551_v55 = vrot.slane %v542_v53, %v550_v52 }
 0x25f   : > { %v552_v56 = vadd.f32 %v551_v55, %v547_v54 }
 0x261   : > { %v553_v57 = vmax.f32 %v552_v56, 0.0 }
 0x263   : > { %554 = vst [vmem:[#allocation11] sm:$0xff] %v553_v57 }
 0x264 PF: > { %p1559_p5 = scmp.eq.s32.totalorder %s1310_s25, 0 }
 0x266   : > { %558 = sbr.rel (%p1559_p5) target bundleno = 910 (0x38e), region = 72 }
 0x26b   : > { %v575_v58 = vld [vmem:[%s1468_s16 + $0x78] sm:$0xff]  ;;  %v1253_v59 = vmov 0.0   ;;  %v574_v60 = vld [vmem:[%s1468_s16 + $0x70] sm:$0xff]  ;;  %vm1254_vm3 = vmmov 0   ;;  %v573_v61 = vld [vmem:[%s1468_s16 + $0x68] sm:$0xff] }
 0x26c   : > { %907 = vmatprep.subr.mxu0 %v1253_v59  ;;  %939 = vmatprep.mubr.msk.f32.mxu0 %vm1254_vm3, %v1253_v59  ;;  %v572_v62 = vld [vmem:[%s1468_s16 + $0x60] sm:$0xff]  ;;  %v571_v63 = vld [vmem:[%s1468_s16 + $0x58] sm:$0xff]  ;;  %v570_v0 = vld [vmem:[%s1468_s16 + $0x50] sm:$0xff] }
 0x26d   : > { %908 = vmatpush3.msra.mxu0 %v575_v58  ;;  %v569_v1 = vld [vmem:[%s1468_s16 + $0x48] sm:$0xff]  ;;  %v568_v2 = vld [vmem:[%s1468_s16 + $0x40] sm:$0xff]  ;;  %v567_v4 = vld [vmem:[%s1468_s16 + $0x38] sm:$0xff] }
 0x26e   : > { %909 = vmatprep.subr.mxu0 %v1253_v59  ;;  %v566_v5 = vld [vmem:[%s1468_s16 + $0x30] sm:$0xff]  ;;  %v565_v6 = vld [vmem:[%s1468_s16 + $0x28] sm:$0xff]  ;;  %v564_v7 = vld [vmem:[%s1468_s16 + $0x20] sm:$0xff] }
 0x26f   : > { %910 = vmatpush3.msra.mxu0 %v574_v60  ;;  %v563_v8 = vld [vmem:[%s1468_s16 + $0x18] sm:$0xff]  ;;  %v562_v9 = vld [vmem:[%s1468_s16 + $0x10] sm:$0xff]  ;;  %v561_v10 = vld [vmem:[%s1468_s16 + $0x8] sm:$0xff] }
 0x270   : > { %911 = vmatprep.subr.mxu0 %v1253_v59  ;;  %v560_v11 = vld [vmem:[%s1468_s16] sm:$0xff]  ;;  %v559_v12 = vld [vmem:[#allocation11] sm:$0xff] }
 0x271   : > { %912 = vmatpush3.msra.mxu0 %v573_v61  ;;  %v647_v34 = vld [vmem:[%s1479_s28] sm:$0x3] }
 0x272   : > { %913 = vmatprep.subr.mxu0 %v1253_v59 }
 0x273   : > { %914 = vmatpush3.msra.mxu0 %v572_v62 }
 0x274   : > { %915 = vmatprep.subr.mxu0 %v1253_v59 }
 0x275   : > { %916 = vmatpush3.msra.mxu0 %v571_v63 }
 0x276   : > { %917 = vmatprep.subr.mxu0 %v1253_v59 }
 0x277   : > { %918 = vmatpush3.msra.mxu0 %v570_v0 }
 0x278   : > { %919 = vmatprep.subr.mxu0 %v1253_v59 }
 0x279   : > { %920 = vmatpush3.msra.mxu0 %v569_v1 }
 0x27a   : > { %921 = vmatprep.subr.mxu0 %v1253_v59 }
 0x27b   : > { %922 = vmatpush3.msra.mxu0 %v568_v2 }
 0x27c   : > { %923 = vmatprep.subr.mxu0 %v1253_v59 }
 0x27d   : > { %924 = vmatpush3.msra.mxu0 %v567_v4 }
 0x27e   : > { %925 = vmatprep.subr.mxu0 %v1253_v59 }
 0x27f   : > { %926 = vmatpush3.msra.mxu0 %v566_v5 }
 0x280   : > { %927 = vmatprep.subr.mxu0 %v1253_v59 }
 0x281   : > { %928 = vmatpush3.msra.mxu0 %v565_v6 }
 0x282   : > { %929 = vmatprep.subr.mxu0 %v1253_v59 }
 0x283   : > { %930 = vmatpush3.msra.mxu0 %v564_v7 }
 0x284   : > { %931 = vmatprep.subr.mxu0 %v1253_v59 }
 0x285   : > { %932 = vmatpush3.msra.mxu0 %v563_v8 }
 0x286   : > { %933 = vmatprep.subr.mxu0 %v1253_v59 }
 0x287   : > { %934 = vmatpush3.msra.mxu0 %v562_v9 }
 0x288   : > { %935 = vmatprep.subr.mxu0 %v1253_v59 }
 0x289   : > { %936 = vmatpush3.msra.mxu0 %v561_v10 }
 0x28a   : > { %937 = vmatprep.subr.mxu0 %v1253_v59 }
 0x28b   : > { %938 = vmatpush3.msra.mxu0 %v560_v11 }
 0x28c   : > { %940 = vmatmul.mubr.f32.vlgmr.msra.gmra.mxu0 %v559_v12 }
 0x34c   : > { %v642_v13 = vpop.f32.mrf.mxu0 }
 0x34d   : > { %v646_v14 = vadd.f32 %v642_v13, %v1481_v3  ;;  %v673_v3 = vlaneseq }
 0x34e   : > { %v941_v15 = vpop.f32.mrf.mxu0 }
 0x34f   : > { %v648_v16 = vrot.slane %v646_v14, 4  ;;  %v674_v33 = vshrl.u32 %v673_v3, 7 }
 0x351   : > { %v649_v17 = vadd.f32 %v648_v16, %v646_v14  ;;  %v675_v37 = vsub.s32 0, %v674_v33  ;;  %v680_v41 = vsub.s32 1, %v674_v33 }
 0x353   : > { %v650_v18 = vrot.slane %v649_v17, 2 }
 0x355   : > { %v651_v19 = vadd.f32 %v650_v18, %v649_v17 }
 0x357   : > { %v652_v20 = vrot.slane %v651_v19, 1 }
 0x359   : > { %v653_v21 = vadd.f32 %v652_v20, %v651_v19 }
 0x35b   : > { %v655_v22 = vmul.f32 0.125, %v653_v21 }
 0x35d   : > { %v656_v23 = vsub.f32 %v646_v14, %v655_v22 }
 0x35f   : > { %v657_v24 = vmul.f32 %v656_v23, %v656_v23 }
 0x361   : > { %v658_v25 = vrot.slane %v657_v24, 4 }
 0x363   : > { %v659_v26 = vadd.f32 %v658_v25, %v657_v24 }
 0x365   : > { %v660_v27 = vrot.slane %v659_v26, 2 }
 0x367   : > { %v661_v28 = vadd.f32 %v660_v27, %v659_v26 }
 0x369   : > { %v662_v29 = vrot.slane %v661_v28, 1 }
 0x36b   : > { %v663_v30 = vadd.f32 %v662_v29, %v661_v28 }
 0x36d   : > { %v664_v31 = vmul.f32 0.125, %v663_v30 }
 0x36f   : > { %v665_v32 = vadd.f32 0.001, %v664_v31 }
 0x371   : > { %1034 = vrsqrt.f32 %v665_v32 }
 0x37e   : > { %v1035_v35 = vpop.eup %1034 }
 0x37f   : > { %v667_v36 = vmul.f32 %v1035_v35, %v647_v34 }
 0x381   : > { %v668_v38 = vmul.f32 %v667_v36, %v655_v22  ;;  %v676_v40 = vrot.slane %v667_v36, %v675_v37 }
 0x383   : > { %v670_v39 = vrot.slane %v668_v38, 7  ;;  %v677_v43 = vmul.f32 %v676_v40, %v646_v14 }
 0x385   : > { %v672_v42 = vsub.f32 %v647_v34, %v670_v39 }
 0x387   : > { %v681_v44 = vrot.slane %v672_v42, %v680_v41 }
 0x389   : > { %v682_v45 = vadd.f32 %v681_v44, %v677_v43 }
 0x38b   : > { %v683_v46 = vmax.f32 %v682_v45, 0.0 }
 0x38d   : > { %684 = vst [vmem:[#allocation11] sm:$0xff] %v683_v46 }
 0x38e PF: > { %p986_p6 = scmp.eq.s32.totalorder %s1310_s25, 1  ;;  %s1255_s26 = smov [#allocation11]  }
 0x38f   : > { %s692_s10 = sshll.u32 %s1255_s26, 4  ;;  %s693_s10 = int_to_ptr.vmem [resolvable:$true] %s692_s10 }
 0x390   : > { %s1170_s9 = scalar_lea.vmem %s693_s10, 128  ;;  %p1177_p12 = scmp.lt.s32.totalorder %s693_s10, %s693_s10 }
 0x391   : > { %p1171_p11 = scmp.ne.s32.totalorder %s693_s10, %s1170_s9  ;;  %p1178_p13 = scmp.lt.s32.totalorder %s1170_s9, %s1170_s9 }
 0x393   : > { %p1172_p3 = pnand %p1171_p11, %p986_p6  ;;  %p1179_p8 = por %p1178_p13, %p1177_p12 }
 0x395   : > { %p1173_p4 = pneg %p1172_p3 }
 0x397   : > { %p1180_p0 = pnand %p1179_p8, %p1173_p4 }
 0x399   : > { %1183 = shalt.err (!%p1180_p0)
}
 0x39a   : > { %959 = dma.vmem_to_hbm [thread:$0]  (%p986_p6), %s693_s10, 128, %s1538_s6, [#allocation4]  }
 0x39b   : > { %1223 = dma.done.wait (%p986_p6), [#allocation4], 128  }
 0x39c   : > { %1225 = vsyncadd (%p986_p6), [#allocation4], 4294967168 }
 0x39d PF: > { %p19_p10 = scmp.ge.s32.totalorder %s1330_s30, 4   ;;  %s1560_s21 = smov %s1232_s22 }
 0x39e   : > { %s1561_s22 = smov %s1236_s23  ;;  %s1562_s23 = smov %s1360_s14 }
 0x39f   : > { %s1563_s24 = smov %s1330_s30  ;;  %21 = sbr.rel (!%p19_p10) target bundleno = 8 (0x8), region = 116 }
 0x3a4   :  { %705 = vsyncpa [#allocation3], 1 }
 0x3a5   :  { %707 = vsyncpa [#allocation3 + $0x1], 1 }
 0x3a6   :  { %708 = vsyncpa [#allocation6], 1 }
 0x3a7   :  { %709 = vsyncpa [#allocation9], 1 }
 0x3a8   :  { %711 = vsyncpa [#allocation9 + $0x1], 1 }
 0x3a9   :  { %712 = vsyncpa [#allocation4], 1 }
 0x3aa   :  { %714 = vsyncpa [#allocation4 + $0x1], 1 }

</bundles_post_ra>
